<compile_context>
chip_gen: v7x
topology: tpu7x:2x2x1
jax: 0.10.0
libtpu: 0.0.40
codegen_flags: <defaults>
</compile_context>

<pallas_src>
import jax
import jax.numpy as jnp
from jax.experimental import pallas as pl
from jax.experimental.pallas import tpu as pltpu

IN_DIM = 32
HIDDEN = 64
NUM_LAYERS = 3
NUM_CLASSES = 10
BATCH = 8
BN_EPS = 1e-5

LANES = 128        # lane-dense padded feature width
HP = LANES         # padded hidden width
CP = LANES         # padded class width


def mlp_kernel(x_ref, w0_ref, b0_ref, wh_ref, bh_ref, g_ref, beta_ref,
               wf_ref, bf_ref, out_ref):
    tb = x_ref.shape[0]                      # rows in this batch tile (static)
    inv_n = 1.0 / tb

    # ---- First Linear + ReLU (bf16 MXU operands, f32 accumulation) ----
    xb = x_ref[...].astype(jnp.bfloat16)
    h = jnp.dot(xb, w0_ref[...], preferred_element_type=jnp.float32)
    h = jnp.maximum(h + b0_ref[...], 0.0)

    # ---- Hidden blocks: Linear -> BatchNorm1d (batch stats) -> ReLU ----
    for i in range(NUM_LAYERS):              # static unroll (compile-time L)
        z = jnp.dot(h.astype(jnp.bfloat16), wh_ref[i],
                    preferred_element_type=jnp.float32) + bh_ref[i]
        # Single cross-sublane pass for both moments: sum of [z, z*z].
        stats = jnp.sum(jnp.concatenate([z, z * z], axis=-1),
                        axis=0, keepdims=True) * inv_n
        mean = stats[:, :HP]
        var = stats[:, HP:] - mean * mean    # biased variance (training BN)
        zn = (z - mean) * jax.lax.rsqrt(var + BN_EPS)
        h = jnp.maximum(zn * g_ref[i] + beta_ref[i], 0.0)

    # ---- Final Linear: lane-dense 128-wide store (sliced in the wrapper) ----
    out = jnp.dot(h.astype(jnp.bfloat16), wf_ref[...],
                  preferred_element_type=jnp.float32) + bf_ref[...]
    out_ref[...] = out.astype(out_ref.dtype)


def _pad_to(a, shape):
    return jnp.pad(a, [(0, t - s) for s, t in zip(a.shape, shape)])


@jax.jit
def mlp_classifier_forward(x, params):
    w0, b0, wh, bh, gamma, beta, wf, bf = params
    b = x.shape[0]
    assert b % 8 == 0, "batch must be sublane-aligned (multiple of 8)"
    # Training-mode BatchNorm requires whole-batch statistics, so the batch
    # tile is the full batch (grid == (1,) here).
    # TODO(synk): add a two-pass cross-tile BN-stats reduction (or switch to
    # inference-mode running stats) so the batch grid can exceed 1 and shard
    # across v7x's two TensorCores for very large batches.
    tb = b
    grid = (b // tb,)

    # Lane-dense zero padding (exact: padded features stay 0 through BN/ReLU)
    # and bf16 weights for the MXU fast path.
    w0p = _pad_to(w0, (IN_DIM, HP)).astype(jnp.bfloat16)
    b0p = _pad_to(b0, (1, HP))
    whp = _pad_to(wh, (NUM_LAYERS, HP, HP)).astype(jnp.bfloat16)
    bhp = _pad_to(bh, (NUM_LAYERS, 1, HP))
    gp = _pad_to(gamma, (NUM_LAYERS, 1, HP))
    betap = _pad_to(beta, (NUM_LAYERS, 1, HP))
    wfp = _pad_to(wf, (HP, CP)).astype(jnp.bfloat16)
    bfp = _pad_to(bf, (1, CP))

    def full(*shape):
        return pl.BlockSpec(shape, lambda i, _s=shape: (0,) * len(_s))

    out = pl.pallas_call(
        mlp_kernel,
        out_shape=jax.ShapeDtypeStruct((b, CP), jnp.float32),
        grid_spec=pltpu.PrefetchScalarGridSpec(
            num_scalar_prefetch=0,
            grid=grid,
            in_specs=[
                pl.BlockSpec((tb, IN_DIM), lambda i: (i, 0)),   # x (batch-tiled)
                full(IN_DIM, HP),                               # w0
                full(1, HP),                                    # b0
                full(NUM_LAYERS, HP, HP),                       # wh
                full(NUM_LAYERS, 1, HP),                        # bh
                full(NUM_LAYERS, 1, HP),                        # gamma
                full(NUM_LAYERS, 1, HP),                        # beta
                full(HP, CP),                                   # wf
                full(1, CP),                                    # bf
            ],
            out_specs=pl.BlockSpec((tb, CP), lambda i: (i, 0)),
        ),
        compiler_params=pltpu.CompilerParams(
            dimension_semantics=("parallel",)),
    )(x, w0p, b0p, whp, bhp, gp, betap, wfp, bfp)
    return out[:, :NUM_CLASSES]


def init_params(key):
    """Deterministic init mimicking PyTorch Linear default (U[-1/sqrt(fan_in), +])."""
    ks = jax.random.split(key, 2 + 2 * NUM_LAYERS + 2)

    def lin(kw, kb, fan_in, fan_out):
        bound = 1.0 / jnp.sqrt(fan_in)
        # stored pre-transposed: (fan_in, fan_out)
        w = jax.random.uniform(kw, (fan_in, fan_out), jnp.float32, -bound, bound)
        b = jax.random.uniform(kb, (1, fan_out), jnp.float32, -bound, bound)
        return w, b

    w0, b0 = lin(ks[0], ks[1], IN_DIM, HIDDEN)

    wh_list, bh_list = [], []
    for i in range(NUM_LAYERS):
        w, b = lin(ks[2 + 2 * i], ks[3 + 2 * i], HIDDEN, HIDDEN)
        wh_list.append(w)
        bh_list.append(b)
    wh = jnp.stack(wh_list, axis=0)                        # (L, HIDDEN, HIDDEN)
    bh = jnp.stack(bh_list, axis=0)                        # (L, 1, HIDDEN)

    gamma = jnp.ones((NUM_LAYERS, 1, HIDDEN), jnp.float32)  # BN weight init = 1
    beta = jnp.zeros((NUM_LAYERS, 1, HIDDEN), jnp.float32)  # BN bias init = 0

    wf, bf = lin(ks[-2], ks[-1], HIDDEN, NUM_CLASSES)

    return (w0, b0, wh, bh, gamma, beta, wf, bf)


def reference_forward(x, params, matmul_dtype=jnp.float32):
    """Pure-JAX reference with identical semantics (optionally bf16 dot operands)."""
    w0, b0, wh, bh, gamma, beta, wf, bf = params

    def mm(a, w):
        return jnp.dot(a.astype(matmul_dtype), w.astype(matmul_dtype),
                       preferred_element_type=jnp.float32)

    h = jnp.maximum(mm(x, w0) + b0, 0.0)
    for i in range(NUM_LAYERS):
        z = mm(h, wh[i]) + bh[i]
        mean = jnp.mean(z, axis=0, keepdims=True)
        var = jnp.mean((z - mean) ** 2, axis=0, keepdims=True)   # biased
        z = (z - mean) * jax.lax.rsqrt(var + BN_EPS) * gamma[i] + beta[i]
        h = jnp.maximum(z, 0.0)
    return mm(h, wf) + bf


if __name__ == "__main__":
    key = jax.random.PRNGKey(0)
    k_x, k_p = jax.random.split(key)

    x = jax.random.normal(k_x, (BATCH, IN_DIM), jnp.float32)
    params = init_params(k_p)

    out = jax.block_until_ready(mlp_classifier_forward(x, params))
    assert out.shape == (BATCH, NUM_CLASSES)

    # Matched-precision check (reference also uses bf16 dot operands).
    ref_bf16 = reference_forward(x, params, matmul_dtype=jnp.bfloat16)
    assert jnp.allclose(out, ref_bf16, atol=5e-3, rtol=5e-3), "mismatch vs bf16 reference"

    # Semantics sanity check vs. the pure-f32 reference (loose: bf16 matmuls).
    ref_f32 = reference_forward(x, params, matmul_dtype=jnp.float32)
    assert jnp.allclose(out, ref_f32, atol=1e-1, rtol=1e-1), "mismatch vs f32 reference"

    print("KERNEL_OK")
</pallas_src>

<mosaic_0001>
module attributes {stable_mosaic.version = 11 : i64} {
  func.func @mlp_kernel(%arg0: i32, %arg1: memref<8x32xf32, #tpu.memory_space<vmem>>, %arg2: memref<32x128xbf16, #tpu.memory_space<vmem>>, %arg3: memref<1x128xf32, #tpu.memory_space<vmem>>, %arg4: memref<3x128x128xbf16, #tpu.memory_space<vmem>>, %arg5: memref<3x1x128xf32, #tpu.memory_space<vmem>>, %arg6: memref<3x1x128xf32, #tpu.memory_space<vmem>>, %arg7: memref<3x1x128xf32, #tpu.memory_space<vmem>>, %arg8: memref<128x128xbf16, #tpu.memory_space<vmem>>, %arg9: memref<1x128xf32, #tpu.memory_space<vmem>>, %arg10: memref<8x128xf32, #tpu.memory_space<vmem>>) attributes {dimension_semantics = [#tpu.dimension_semantics<parallel>], iteration_bounds = array<i64: 1>, scalar_prefetch = 0 : i64, scratch_operands = 0 : i64, tpu.core_type = #tpu.core_type<tc>, window_params = [{transform_indices = @transform_0, window_bounds = array<i64: 8, 32>}, {pipeline_mode = #tpu.pipeline_mode<synchronous>, transform_indices = @transform_1, window_bounds = array<i64: 32, 128>}, {pipeline_mode = #tpu.pipeline_mode<synchronous>, transform_indices = @transform_2, window_bounds = array<i64: 1, 128>}, {pipeline_mode = #tpu.pipeline_mode<synchronous>, transform_indices = @transform_3, window_bounds = array<i64: 3, 128, 128>}, {pipeline_mode = #tpu.pipeline_mode<synchronous>, transform_indices = @transform_4, window_bounds = array<i64: 3, 1, 128>}, {pipeline_mode = #tpu.pipeline_mode<synchronous>, transform_indices = @transform_5, window_bounds = array<i64: 3, 1, 128>}, {pipeline_mode = #tpu.pipeline_mode<synchronous>, transform_indices = @transform_6, window_bounds = array<i64: 3, 1, 128>}, {pipeline_mode = #tpu.pipeline_mode<synchronous>, transform_indices = @transform_7, window_bounds = array<i64: 128, 128>}, {pipeline_mode = #tpu.pipeline_mode<synchronous>, transform_indices = @transform_8, window_bounds = array<i64: 1, 128>}, {transform_indices = @transform_9, window_bounds = array<i64: 8, 128>}]} {
    %c0 = arith.constant 0 : index
    %c0_0 = arith.constant 0 : index
    %0 = vector.load %arg1[%c0, %c0_0] : memref<8x32xf32, #tpu.memory_space<vmem>>, vector<8x32xf32>
    %1 = arith.truncf %0 : vector<8x32xf32> to vector<8x32xbf16>
    %c0_1 = arith.constant 0 : index
    %c0_2 = arith.constant 0 : index
    %2 = vector.load %arg2[%c0_1, %c0_2] : memref<32x128xbf16, #tpu.memory_space<vmem>>, vector<32x128xbf16>
    %cst = arith.constant dense<0.000000e+00> : vector<8x128xf32>
    %3 = tpu.matmul %1, %2, %cst {dimension_numbers = #tpu.dot_dimension_numbers<[1], [0], [0], [1], [0, 0, 1, 1], [], []>} : vector<8x32xbf16>, vector<32x128xbf16>, vector<8x128xf32> -> vector<8x128xf32>
    %c0_3 = arith.constant 0 : index
    %c0_4 = arith.constant 0 : index
    %4 = vector.load %arg3[%c0_3, %c0_4] : memref<1x128xf32, #tpu.memory_space<vmem>>, vector<1x128xf32>
    %5 = vector.broadcast %4 : vector<1x128xf32> to vector<8x128xf32>
    %6 = arith.addf %3, %5 : vector<8x128xf32>
    %cst_5 = arith.constant 0.000000e+00 : f32
    %7 = vector.broadcast %cst_5 : f32 to vector<8x128xf32>
    %8 = arith.maximumf %6, %7 : vector<8x128xf32>
    %9 = arith.truncf %8 : vector<8x128xf32> to vector<8x128xbf16>
    %c0_6 = arith.constant 0 : index
    %c0_7 = arith.constant 0 : index
    %c0_8 = arith.constant 0 : index
    %10 = vector.load %arg4[%c0_6, %c0_7, %c0_8] : memref<3x128x128xbf16, #tpu.memory_space<vmem>>, vector<1x128x128xbf16>
    %11 = vector.shape_cast %10 : vector<1x128x128xbf16> to vector<128x128xbf16>
    %cst_9 = arith.constant dense<0.000000e+00> : vector<8x128xf32>
    %12 = tpu.matmul %9, %11, %cst_9 {dimension_numbers = #tpu.dot_dimension_numbers<[1], [0], [0], [1], [0, 0, 1, 1], [], []>} : vector<8x128xbf16>, vector<128x128xbf16>, vector<8x128xf32> -> vector<8x128xf32>
    %c0_10 = arith.constant 0 : index
    %c0_11 = arith.constant 0 : index
    %c0_12 = arith.constant 0 : index
    %13 = vector.load %arg5[%c0_10, %c0_11, %c0_12] : memref<3x1x128xf32, #tpu.memory_space<vmem>>, vector<1x1x128xf32>
    %14 = vector.shape_cast %13 : vector<1x1x128xf32> to vector<1x128xf32>
    %15 = vector.broadcast %14 : vector<1x128xf32> to vector<8x128xf32>
    %16 = arith.addf %12, %15 : vector<8x128xf32>
    %17 = arith.mulf %16, %16 : vector<8x128xf32>
    %18 = tpu.concatenate %16, %17 in 1 : vector<8x128xf32>, vector<8x128xf32> -> vector<8x256xf32>
    %cst_13 = arith.constant dense<0.000000e+00> : vector<256xf32>
    %19 = vector.multi_reduction <add>, %18, %cst_13 [0] : vector<8x256xf32> to vector<256xf32>
    %20 = vector.shape_cast %19 : vector<256xf32> to vector<1x256xf32>
    %cst_14 = arith.constant 1.250000e-01 : f32
    %21 = vector.broadcast %cst_14 : f32 to vector<1x256xf32>
    %22 = arith.mulf %20, %21 : vector<1x256xf32>
    %23 = vector.extract_strided_slice %22 {offsets = [0, 0], sizes = [1, 128], strides = [1, 1]} : vector<1x256xf32> to vector<1x128xf32>
    %24 = vector.extract_strided_slice %22 {offsets = [0, 128], sizes = [1, 128], strides = [1, 1]} : vector<1x256xf32> to vector<1x128xf32>
    %25 = arith.mulf %23, %23 : vector<1x128xf32>
    %26 = arith.subf %24, %25 : vector<1x128xf32>
    %27 = vector.broadcast %23 : vector<1x128xf32> to vector<8x128xf32>
    %28 = arith.subf %16, %27 : vector<8x128xf32>
    %cst_15 = arith.constant 9.99999974E-6 : f32
    %29 = vector.broadcast %cst_15 : f32 to vector<1x128xf32>
    %30 = arith.addf %26, %29 : vector<1x128xf32>
    %31 = math.rsqrt %30 : vector<1x128xf32>
    %32 = vector.broadcast %31 : vector<1x128xf32> to vector<8x128xf32>
    %33 = arith.mulf %28, %32 : vector<8x128xf32>
    %c0_16 = arith.constant 0 : index
    %c0_17 = arith.constant 0 : index
    %c0_18 = arith.constant 0 : index
    %34 = vector.load %arg6[%c0_16, %c0_17, %c0_18] : memref<3x1x128xf32, #tpu.memory_space<vmem>>, vector<1x1x128xf32>
    %35 = vector.shape_cast %34 : vector<1x1x128xf32> to vector<1x128xf32>
    %36 = vector.broadcast %35 : vector<1x128xf32> to vector<8x128xf32>
    %37 = arith.mulf %33, %36 : vector<8x128xf32>
    %c0_19 = arith.constant 0 : index
    %c0_20 = arith.constant 0 : index
    %c0_21 = arith.constant 0 : index
    %38 = vector.load %arg7[%c0_19, %c0_20, %c0_21] : memref<3x1x128xf32, #tpu.memory_space<vmem>>, vector<1x1x128xf32>
    %39 = vector.shape_cast %38 : vector<1x1x128xf32> to vector<1x128xf32>
    %40 = vector.broadcast %39 : vector<1x128xf32> to vector<8x128xf32>
    %41 = arith.addf %37, %40 : vector<8x128xf32>
    %cst_22 = arith.constant 0.000000e+00 : f32
    %42 = vector.broadcast %cst_22 : f32 to vector<8x128xf32>
    %43 = arith.maximumf %41, %42 : vector<8x128xf32>
    %44 = arith.truncf %43 : vector<8x128xf32> to vector<8x128xbf16>
    %c1 = arith.constant 1 : index
    %c0_23 = arith.constant 0 : index
    %c0_24 = arith.constant 0 : index
    %45 = vector.load %arg4[%c1, %c0_23, %c0_24] : memref<3x128x128xbf16, #tpu.memory_space<vmem>>, vector<1x128x128xbf16>
    %46 = vector.shape_cast %45 : vector<1x128x128xbf16> to vector<128x128xbf16>
    %cst_25 = arith.constant dense<0.000000e+00> : vector<8x128xf32>
    %47 = tpu.matmul %44, %46, %cst_25 {dimension_numbers = #tpu.dot_dimension_numbers<[1], [0], [0], [1], [0, 0, 1, 1], [], []>} : vector<8x128xbf16>, vector<128x128xbf16>, vector<8x128xf32> -> vector<8x128xf32>
    %c1_26 = arith.constant 1 : index
    %c0_27 = arith.constant 0 : index
    %c0_28 = arith.constant 0 : index
    %48 = vector.load %arg5[%c1_26, %c0_27, %c0_28] : memref<3x1x128xf32, #tpu.memory_space<vmem>>, vector<1x1x128xf32>
    %49 = vector.shape_cast %48 : vector<1x1x128xf32> to vector<1x128xf32>
    %50 = vector.broadcast %49 : vector<1x128xf32> to vector<8x128xf32>
    %51 = arith.addf %47, %50 : vector<8x128xf32>
    %52 = arith.mulf %51, %51 : vector<8x128xf32>
    %53 = tpu.concatenate %51, %52 in 1 : vector<8x128xf32>, vector<8x128xf32> -> vector<8x256xf32>
    %cst_29 = arith.constant dense<0.000000e+00> : vector<256xf32>
    %54 = vector.multi_reduction <add>, %53, %cst_29 [0] : vector<8x256xf32> to vector<256xf32>
    %55 = vector.shape_cast %54 : vector<256xf32> to vector<1x256xf32>
    %cst_30 = arith.constant 1.250000e-01 : f32
    %56 = vector.broadcast %cst_30 : f32 to vector<1x256xf32>
    %57 = arith.mulf %55, %56 : vector<1x256xf32>
    %58 = vector.extract_strided_slice %57 {offsets = [0, 0], sizes = [1, 128], strides = [1, 1]} : vector<1x256xf32> to vector<1x128xf32>
    %59 = vector.extract_strided_slice %57 {offsets = [0, 128], sizes = [1, 128], strides = [1, 1]} : vector<1x256xf32> to vector<1x128xf32>
    %60 = arith.mulf %58, %58 : vector<1x128xf32>
    %61 = arith.subf %59, %60 : vector<1x128xf32>
    %62 = vector.broadcast %58 : vector<1x128xf32> to vector<8x128xf32>
    %63 = arith.subf %51, %62 : vector<8x128xf32>
    %cst_31 = arith.constant 9.99999974E-6 : f32
    %64 = vector.broadcast %cst_31 : f32 to vector<1x128xf32>
    %65 = arith.addf %61, %64 : vector<1x128xf32>
    %66 = math.rsqrt %65 : vector<1x128xf32>
    %67 = vector.broadcast %66 : vector<1x128xf32> to vector<8x128xf32>
    %68 = arith.mulf %63, %67 : vector<8x128xf32>
    %c1_32 = arith.constant 1 : index
    %c0_33 = arith.constant 0 : index
    %c0_34 = arith.constant 0 : index
    %69 = vector.load %arg6[%c1_32, %c0_33, %c0_34] : memref<3x1x128xf32, #tpu.memory_space<vmem>>, vector<1x1x128xf32>
    %70 = vector.shape_cast %69 : vector<1x1x128xf32> to vector<1x128xf32>
    %71 = vector.broadcast %70 : vector<1x128xf32> to vector<8x128xf32>
    %72 = arith.mulf %68, %71 : vector<8x128xf32>
    %c1_35 = arith.constant 1 : index
    %c0_36 = arith.constant 0 : index
    %c0_37 = arith.constant 0 : index
    %73 = vector.load %arg7[%c1_35, %c0_36, %c0_37] : memref<3x1x128xf32, #tpu.memory_space<vmem>>, vector<1x1x128xf32>
    %74 = vector.shape_cast %73 : vector<1x1x128xf32> to vector<1x128xf32>
    %75 = vector.broadcast %74 : vector<1x128xf32> to vector<8x128xf32>
    %76 = arith.addf %72, %75 : vector<8x128xf32>
    %cst_38 = arith.constant 0.000000e+00 : f32
    %77 = vector.broadcast %cst_38 : f32 to vector<8x128xf32>
    %78 = arith.maximumf %76, %77 : vector<8x128xf32>
    %79 = arith.truncf %78 : vector<8x128xf32> to vector<8x128xbf16>
    %c2 = arith.constant 2 : index
    %c0_39 = arith.constant 0 : index
    %c0_40 = arith.constant 0 : index
    %80 = vector.load %arg4[%c2, %c0_39, %c0_40] : memref<3x128x128xbf16, #tpu.memory_space<vmem>>, vector<1x128x128xbf16>
    %81 = vector.shape_cast %80 : vector<1x128x128xbf16> to vector<128x128xbf16>
    %cst_41 = arith.constant dense<0.000000e+00> : vector<8x128xf32>
    %82 = tpu.matmul %79, %81, %cst_41 {dimension_numbers = #tpu.dot_dimension_numbers<[1], [0], [0], [1], [0, 0, 1, 1], [], []>} : vector<8x128xbf16>, vector<128x128xbf16>, vector<8x128xf32> -> vector<8x128xf32>
    %c2_42 = arith.constant 2 : index
    %c0_43 = arith.constant 0 : index
    %c0_44 = arith.constant 0 : index
    %83 = vector.load %arg5[%c2_42, %c0_43, %c0_44] : memref<3x1x128xf32, #tpu.memory_space<vmem>>, vector<1x1x128xf32>
    %84 = vector.shape_cast %83 : vector<1x1x128xf32> to vector<1x128xf32>
    %85 = vector.broadcast %84 : vector<1x128xf32> to vector<8x128xf32>
    %86 = arith.addf %82, %85 : vector<8x128xf32>
    %87 = arith.mulf %86, %86 : vector<8x128xf32>
    %88 = tpu.concatenate %86, %87 in 1 : vector<8x128xf32>, vector<8x128xf32> -> vector<8x256xf32>
    %cst_45 = arith.constant dense<0.000000e+00> : vector<256xf32>
    %89 = vector.multi_reduction <add>, %88, %cst_45 [0] : vector<8x256xf32> to vector<256xf32>
    %90 = vector.shape_cast %89 : vector<256xf32> to vector<1x256xf32>
    %cst_46 = arith.constant 1.250000e-01 : f32
    %91 = vector.broadcast %cst_46 : f32 to vector<1x256xf32>
    %92 = arith.mulf %90, %91 : vector<1x256xf32>
    %93 = vector.extract_strided_slice %92 {offsets = [0, 0], sizes = [1, 128], strides = [1, 1]} : vector<1x256xf32> to vector<1x128xf32>
    %94 = vector.extract_strided_slice %92 {offsets = [0, 128], sizes = [1, 128], strides = [1, 1]} : vector<1x256xf32> to vector<1x128xf32>
    %95 = arith.mulf %93, %93 : vector<1x128xf32>
    %96 = arith.subf %94, %95 : vector<1x128xf32>
    %97 = vector.broadcast %93 : vector<1x128xf32> to vector<8x128xf32>
    %98 = arith.subf %86, %97 : vector<8x128xf32>
    %cst_47 = arith.constant 9.99999974E-6 : f32
    %99 = vector.broadcast %cst_47 : f32 to vector<1x128xf32>
    %100 = arith.addf %96, %99 : vector<1x128xf32>
    %101 = math.rsqrt %100 : vector<1x128xf32>
    %102 = vector.broadcast %101 : vector<1x128xf32> to vector<8x128xf32>
    %103 = arith.mulf %98, %102 : vector<8x128xf32>
    %c2_48 = arith.constant 2 : index
    %c0_49 = arith.constant 0 : index
    %c0_50 = arith.constant 0 : index
    %104 = vector.load %arg6[%c2_48, %c0_49, %c0_50] : memref<3x1x128xf32, #tpu.memory_space<vmem>>, vector<1x1x128xf32>
    %105 = vector.shape_cast %104 : vector<1x1x128xf32> to vector<1x128xf32>
    %106 = vector.broadcast %105 : vector<1x128xf32> to vector<8x128xf32>
    %107 = arith.mulf %103, %106 : vector<8x128xf32>
    %c2_51 = arith.constant 2 : index
    %c0_52 = arith.constant 0 : index
    %c0_53 = arith.constant 0 : index
    %108 = vector.load %arg7[%c2_51, %c0_52, %c0_53] : memref<3x1x128xf32, #tpu.memory_space<vmem>>, vector<1x1x128xf32>
    %109 = vector.shape_cast %108 : vector<1x1x128xf32> to vector<1x128xf32>
    %110 = vector.broadcast %109 : vector<1x128xf32> to vector<8x128xf32>
    %111 = arith.addf %107, %110 : vector<8x128xf32>
    %cst_54 = arith.constant 0.000000e+00 : f32
    %112 = vector.broadcast %cst_54 : f32 to vector<8x128xf32>
    %113 = arith.maximumf %111, %112 : vector<8x128xf32>
    %114 = arith.truncf %113 : vector<8x128xf32> to vector<8x128xbf16>
    %c0_55 = arith.constant 0 : index
    %c0_56 = arith.constant 0 : index
    %115 = vector.load %arg8[%c0_55, %c0_56] : memref<128x128xbf16, #tpu.memory_space<vmem>>, vector<128x128xbf16>
    %cst_57 = arith.constant dense<0.000000e+00> : vector<8x128xf32>
    %116 = tpu.matmul %114, %115, %cst_57 {dimension_numbers = #tpu.dot_dimension_numbers<[1], [0], [0], [1], [0, 0, 1, 1], [], []>} : vector<8x128xbf16>, vector<128x128xbf16>, vector<8x128xf32> -> vector<8x128xf32>
    %c0_58 = arith.constant 0 : index
    %c0_59 = arith.constant 0 : index
    %117 = vector.load %arg9[%c0_58, %c0_59] : memref<1x128xf32, #tpu.memory_space<vmem>>, vector<1x128xf32>
    %118 = vector.broadcast %117 : vector<1x128xf32> to vector<8x128xf32>
    %119 = arith.addf %116, %118 : vector<8x128xf32>
    %c0_60 = arith.constant 0 : index
    %c0_61 = arith.constant 0 : index
    %120 = vector.load %arg10[%c0_60, %c0_61] : memref<8x128xf32, #tpu.memory_space<vmem>>, vector<8x128xf32>
    tpu.vector_store %arg10[%c0_60, %c0_61], %119 {strides = array<i32>} : memref<8x128xf32, #tpu.memory_space<vmem>>, vector<8x128xf32>,
    return
  }
  func.func @transform_0(%arg0: i32) -> (i32, i32) {
    %c0_i32 = arith.constant 0 : i32
    %c0_i32_0 = arith.constant 0 : i32
    return %arg0, %c0_i32 : i32, i32
  }
  func.func @transform_1(%arg0: i32) -> (i32, i32) {
    %c0_i32 = arith.constant 0 : i32
    %c0_i32_0 = arith.constant 0 : i32
    %c0_i32_1 = arith.constant 0 : i32
    return %c0_i32, %c0_i32_0 : i32, i32
  }
  func.func @transform_2(%arg0: i32) -> (i32, i32) {
    %c0_i32 = arith.constant 0 : i32
    %c0_i32_0 = arith.constant 0 : i32
    %c0_i32_1 = arith.constant 0 : i32
    return %c0_i32, %c0_i32_0 : i32, i32
  }
  func.func @transform_3(%arg0: i32) -> (i32, i32, i32) {
    %c0_i32 = arith.constant 0 : i32
    %c0_i32_0 = arith.constant 0 : i32
    %c0_i32_1 = arith.constant 0 : i32
    %c0_i32_2 = arith.constant 0 : i32
    return %c0_i32, %c0_i32_0, %c0_i32_1 : i32, i32, i32
  }
  func.func @transform_4(%arg0: i32) -> (i32, i32, i32) {
    %c0_i32 = arith.constant 0 : i32
    %c0_i32_0 = arith.constant 0 : i32
    %c0_i32_1 = arith.constant 0 : i32
    %c0_i32_2 = arith.constant 0 : i32
    return %c0_i32, %c0_i32_0, %c0_i32_1 : i32, i32, i32
  }
  func.func @transform_5(%arg0: i32) -> (i32, i32, i32) {
    %c0_i32 = arith.constant 0 : i32
    %c0_i32_0 = arith.constant 0 : i32
    %c0_i32_1 = arith.constant 0 : i32
    %c0_i32_2 = arith.constant 0 : i32
    return %c0_i32, %c0_i32_0, %c0_i32_1 : i32, i32, i32
  }
  func.func @transform_6(%arg0: i32) -> (i32, i32, i32) {
    %c0_i32 = arith.constant 0 : i32
    %c0_i32_0 = arith.constant 0 : i32
    %c0_i32_1 = arith.constant 0 : i32
    %c0_i32_2 = arith.constant 0 : i32
    return %c0_i32, %c0_i32_0, %c0_i32_1 : i32, i32, i32
  }
  func.func @transform_7(%arg0: i32) -> (i32, i32) {
    %c0_i32 = arith.constant 0 : i32
    %c0_i32_0 = arith.constant 0 : i32
    %c0_i32_1 = arith.constant 0 : i32
    return %c0_i32, %c0_i32_0 : i32, i32
  }
  func.func @transform_8(%arg0: i32) -> (i32, i32) {
    %c0_i32 = arith.constant 0 : i32
    %c0_i32_0 = arith.constant 0 : i32
    %c0_i32_1 = arith.constant 0 : i32
    return %c0_i32, %c0_i32_0 : i32, i32
  }
  func.func @transform_9(%arg0: i32) -> (i32, i32) {
    %c0_i32 = arith.constant 0 : i32
    %c0_i32_0 = arith.constant 0 : i32
    return %arg0, %c0_i32 : i32, i32
  }
}

</mosaic_0001>

<bundles_post_ra>
// kernel: mlp_classifier_forward.1
= control target key start
LH: loop header
LB: loop body
LE: loop exit
PB: predicated region body
PF: predicated region fallthrough
CT: control target
= control target key end

     0   :  { %v967_v1 = vmov 0.0   ;;  %vm968_vm0 = vmmov 0   ;;  %vm59_vm1 = vcmask 261120   ;;  %s1214_s0 = inlined_call_operand.vmem [shape: f32[8,32], index: 0, kind: input, shape index: {}]   ;;  %s1215_s1 = inlined_call_operand.vmem [shape: bf16[32,128], index: 1, kind: input, shape index: {}]   ;;  %s1216_s2 = inlined_call_operand.vmem [shape: f32[1,128], index: 2, kind: input, shape index: {}]   ;;  %s1217_s3 = inlined_call_operand.vmem [shape: bf16[3,128,128], index: 3, kind: input, shape index: {}]   ;;  %s1218_s4 = inlined_call_operand.vmem [shape: f32[3,1,128], index: 4, kind: input, shape index: {}]   ;;  %s1219_s5 = inlined_call_operand.vmem [shape: f32[3,1,128], index: 5, kind: input, shape index: {}]   ;;  %s1220_s6 = inlined_call_operand.vmem [shape: f32[3,1,128], index: 6, kind: input, shape index: {}]   ;;  %s1221_s7 = inlined_call_operand.vmem [shape: bf16[128,128], index: 7, kind: input, shape index: {}]   ;;  %s1222_s8 = inlined_call_operand.vmem [shape: f32[1,128], index: 8, kind: input, shape index: {}]   ;;  %s1223_s9 = inlined_call_operand.hbm [shape: f32[8,128], index: 9, kind: output, shape index: {}]  }
   0x1   :  { %v903_v0 = vld [vmem:[%s1215_s1] sm:$0xff]   ;;  %812 = vmatprep.subr.bf16.mxu0 %v967_v1  ;;  %v904_v2 = vld [vmem:[%s1215_s1 + $0x8] sm:$0xff]   ;;  %820 = vmatprep.subr.bf16.mxu1 %v967_v1  ;;  %v907_v7 = vld [vmem:[%s1217_s3 + $0x10] sm:$0xff]  }
   0x2   :  { %813 = vmatpush3.bf16.msra.mxu0 %v903_v0  ;;  %816 = vmatprep.mubr.msk.bf16.mxu0 %vm968_vm0, %v967_v1  ;;  %v34_v3 = vld [vmem:[%s1214_s0] sm:$0xff]  ;;  %v906_v6 = vld [vmem:[%s1217_s3 + $0x8] sm:$0xff]   ;;  %v908_v8 = vld [vmem:[%s1217_s3 + $0x18] sm:$0xff]  }
   0x3   :  { %814 = vmatprep.subr.bf16.mxu0 %v967_v1  ;;  %v905_v4 = vld [vmem:[%s1217_s3] sm:$0xff]   ;;  %836 = vmatprep.mubr.msk.bf16.mxu1 %vm968_vm0, %v967_v1  ;;  %v35_v5 = vpack.c.bf16 %v34_v3, %v34_v3  ;;  %v910_v10 = vld [vmem:[%s1217_s3 + $0x28] sm:$0xff]  }
   0x4   :  { %821 = vmatpush3.bf16.msra.mxu1 %v905_v4  ;;  %v909_v9 = vld [vmem:[%s1217_s3 + $0x20] sm:$0xff]  }
   0x5   :  { %822 = vmatprep.subr.bf16.mxu1 %v967_v1 }
   0x6   :  { %815 = vmatpush3.bf16.msra.mxu0 %v904_v2 }
   0x7   :  { %840 = vmatprep.subr.bf16.mxu0 %v967_v1 }
   0x8   :  { %823 = vmatpush3.bf16.msra.mxu1 %v906_v6 }
   0x9   :  { %817 = vmatmul.mubr.msk.bf16.vlgmr.msra.gmra.mrb[0].mxu0 %vm59_vm1, %v35_v5  ;;  %824 = vmatprep.subr.bf16.mxu1 %v967_v1 }
   0xa   :  { %856 = vmatprep.mubr.msk.bf16.mxu0 %vm968_vm0, %v967_v1 }
   0xc   :  { %825 = vmatpush3.bf16.msra.mxu1 %v907_v7 }
   0xd   :  { %826 = vmatprep.subr.bf16.mxu1 %v967_v1 }
  0x10   :  { %827 = vmatpush3.bf16.msra.mxu1 %v908_v8 }
  0x11   :  { %828 = vmatprep.subr.bf16.mxu1 %v967_v1 }
  0x14   :  { %829 = vmatpush3.bf16.msra.mxu1 %v909_v9 }
  0x15   :  { %830 = vmatprep.subr.bf16.mxu1 %v967_v1 }
  0x18   :  { %831 = vmatpush3.bf16.msra.mxu1 %v910_v10 }
  0x19   :  { %832 = vmatprep.subr.bf16.mxu1 %v967_v1 }
  0x1a   :  { %14 = vsyncpa [#allocation3], 0  ;;  %v911_v11 = vld [vmem:[%s1217_s3 + $0x30] sm:$0xff]   ;;  %v912_v12 = vld [vmem:[%s1217_s3 + $0x38] sm:$0xff]   ;;  %s969_s23 = smov [#allocation2]  }
  0x1b   :  { %v689_v13 = vld [vmem:[%s1216_s2] ss:$0 sm:$0xff]  ;;  %v914_v22 = vld [vmem:[%s1217_s3 + $0x48] sm:$0xff]   ;;  %v915_v23 = vld [vmem:[%s1217_s3 + $0x50] sm:$0xff]   ;;  %s681_s24 = sshll.u32 %s969_s23, 4  ;;  %s682_s24 = int_to_ptr.vmem [resolvable:$true] %s681_s24 }
  0x1c   :  { %833 = vmatpush3.bf16.msra.mxu1 %v911_v11  ;;  %v913_v21 = vld [vmem:[%s1217_s3 + $0x40] sm:$0xff]   ;;  %v916_v24 = vld [vmem:[%s1217_s3 + $0x58] sm:$0xff]   ;;  %v918_v26 = vld [vmem:[%s1217_s3 + $0x68] sm:$0xff]   ;;  %p948_p1 = scmp.lt.s32.totalorder %s682_s24, %s682_s24 }
  0x1d   :  { %834 = vmatprep.subr.bf16.mxu1 %v967_v1  ;;  %841 = vmatpush3.bf16.msra.mxu0 %v913_v21  ;;  %v917_v25 = vld [vmem:[%s1217_s3 + $0x60] sm:$0xff]   ;;  %v919_v27 = vld [vmem:[%s1217_s3 + $0x70] sm:$0xff]   ;;  %v920_v28 = vld [vmem:[%s1217_s3 + $0x78] sm:$0xff]  }
  0x1e   :  { %842 = vmatprep.subr.bf16.mxu0 %v967_v1  ;;  %v693_v29 = vld [vmem:[%s1218_s4] ss:$0 sm:$0xff]  ;;  %v922_v63 = vld [vmem:[%s1217_s3 + $0x88] sm:$0xff]   ;;  %v923_v0 = vld [vmem:[%s1217_s3 + $0x90] sm:$0xff]  }
  0x1f   :  { %v702_v55 = vld [vmem:[%s1219_s5] ss:$0 sm:$0xff]  ;;  %v924_v2 = vld [vmem:[%s1217_s3 + $0x98] sm:$0xff]   ;;  %v926_v4 = vld [vmem:[%s1217_s3 + $0xa8] sm:$0xff]  }
  0x20   :  { %835 = vmatpush3.bf16.msra.mxu1 %v912_v12  ;;  %v703_v57 = vld [vmem:[%s1220_s6] ss:$0 sm:$0xff]  ;;  %v927_v5 = vld [vmem:[%s1217_s3 + $0xb0] sm:$0xff]   ;;  %v928_v6 = vld [vmem:[%s1217_s3 + $0xb8] sm:$0xff]  }
  0x21   :  { %860 = vmatprep.subr.bf16.mxu1 %v967_v1  ;;  %843 = vmatpush3.bf16.msra.mxu0 %v914_v22  ;;  %v921_v62 = vld [vmem:[%s1217_s3 + $0x80] sm:$0xff]  }
  0x22   :  { %844 = vmatprep.subr.bf16.mxu0 %v967_v1  ;;  %v925_v3 = vld [vmem:[%s1217_s3 + $0xa0] sm:$0xff]  }
  0x23   :  { %v721_v7 = vld [vmem:[%s1218_s4 + $0x1] ss:$0 sm:$0xff] }
  0x25   :  { %845 = vmatpush3.bf16.msra.mxu0 %v915_v23 }
  0x26   :  { %846 = vmatprep.subr.bf16.mxu0 %v967_v1 }
  0x29   :  { %847 = vmatpush3.bf16.msra.mxu0 %v916_v24 }
  0x2a   :  { %848 = vmatprep.subr.bf16.mxu0 %v967_v1 }
  0x2d   :  { %849 = vmatpush3.bf16.msra.mxu0 %v917_v25 }
  0x2e   :  { %850 = vmatprep.subr.bf16.mxu0 %v967_v1 }
  0x31   :  { %851 = vmatpush3.bf16.msra.mxu0 %v918_v26 }
  0x32   :  { %852 = vmatprep.subr.bf16.mxu0 %v967_v1 }
  0x35   :  { %853 = vmatpush3.bf16.msra.mxu0 %v919_v27 }
  0x36   :  { %854 = vmatprep.subr.bf16.mxu0 %v967_v1 }
  0x39   :  { %855 = vmatpush3.bf16.msra.mxu0 %v920_v28 }
  0x3a   :  { %880 = vmatprep.subr.bf16.mxu0 %v967_v1 }
  0xdc   :  { %v97_v14 = vpop.f32.mrb[0].mxu0 }
  0xdd   :  { %v98_v15 = vadd.f32 %v689_v13, %v97_v14  ;;  %v818_v16 = vpop.f32.mrb[1].mxu0 }
  0xde   :  { %v100_v17 = vpop.f32.mrb[2].mxu0 }
  0xdf   :  { %v103_v18 = vmax.f32 %v98_v15, 0.0  ;;  %v819_v19 = vpop.f32.mrb[3].mxu0 }
  0xe1   :  { %v104_v20 = vpack.c.bf16 %v103_v18, %v103_v18 }
  0xe3   :  { %837 = vmatmul.mubr.bf16.vlgmr.msra.gmra.mrb[0].mxu1 %v104_v20 }
  0xe4   :  { %876 = vmatprep.mubr.msk.bf16.mxu1 %vm968_vm0, %v967_v1  ;;  %861 = vmatpush3.bf16.msra.mxu1 %v921_v62 }
  0xe5   :  { %862 = vmatprep.subr.bf16.mxu1 %v967_v1 }
  0xe8   :  { %863 = vmatpush3.bf16.msra.mxu1 %v922_v63 }
  0xe9   :  { %864 = vmatprep.subr.bf16.mxu1 %v967_v1 }
  0xec   :  { %865 = vmatpush3.bf16.msra.mxu1 %v923_v0 }
  0xed   :  { %866 = vmatprep.subr.bf16.mxu1 %v967_v1 }
  0xf0   :  { %867 = vmatpush3.bf16.msra.mxu1 %v924_v2 }
  0xf1   :  { %868 = vmatprep.subr.bf16.mxu1 %v967_v1 }
  0xf4   :  { %869 = vmatpush3.bf16.msra.mxu1 %v925_v3 }
  0xf5   :  { %870 = vmatprep.subr.bf16.mxu1 %v967_v1 }
  0xf8   :  { %871 = vmatpush3.bf16.msra.mxu1 %v926_v4 }
  0xf9   :  { %872 = vmatprep.subr.bf16.mxu1 %v967_v1 }
  0xfc   :  { %873 = vmatpush3.bf16.msra.mxu1 %v927_v5 }
  0xfd   :  { %874 = vmatprep.subr.bf16.mxu1 %v967_v1 }
 0x100   :  { %875 = vmatpush3.bf16.msra.mxu1 %v928_v6 }
 0x1b6   :  { %v210_v30 = vpop.f32.mrb[0].mxu1 }
 0x1b7   :  { %v211_v31 = vadd.f32 %v693_v29, %v210_v30  ;;  %v838_v32 = vpop.f32.mrb[1].mxu1 }
 0x1b8   :  { %v213_v33 = vpop.f32.mrb[2].mxu1 }
 0x1b9   :  { %v216_v34 = vmul.f32 %v211_v31, %v211_v31  ;;  %v217_v35 = vrot.slane %v211_v31, 4  ;;  %v839_v36 = vpop.f32.mrb[3].mxu1  ;;  %v731_v33 = vld [vmem:[%s1219_s5 + $0x1] ss:$0 sm:$0xff] }
 0x1bb   :  { %v218_v37 = vadd.f32 %v217_v35, %v211_v31  ;;  %v223_v38 = vrot.slane %v216_v34, 4  ;;  %v733_v35 = vld [vmem:[%s1220_s6 + $0x1] ss:$0 sm:$0xff] }
 0x1bd   :  { %v219_v39 = vrot.slane %v218_v37, 2  ;;  %v224_v40 = vadd.f32 %v223_v38, %v216_v34 }
 0x1bf   :  { %v220_v41 = vadd.f32 %v219_v39, %v218_v37  ;;  %v225_v42 = vrot.slane %v224_v40, 2 }
 0x1c1   :  { %v221_v43 = vrot.slane %v220_v41, 1  ;;  %v226_v44 = vadd.f32 %v225_v42, %v224_v40  ;;  %v929_v40 = vld [vmem:[%s1221_s7] sm:$0xff]   ;;  %v931_v42 = vld [vmem:[%s1221_s7 + $0x10] sm:$0xff]  }
 0x1c3   :  { %v222_v45 = vadd.f32 %v221_v43, %v220_v41  ;;  %v227_v46 = vrot.slane %v226_v44, 1  ;;  %v930_v41 = vld [vmem:[%s1221_s7 + $0x8] sm:$0xff]   ;;  %v932_v43 = vld [vmem:[%s1221_s7 + $0x18] sm:$0xff]  }
 0x1c5   :  { %v228_v47 = vadd.f32 %v227_v46, %v226_v44  ;;  %v229_v48 = vmul.f32 0.125, %v222_v45  ;;  %v933_v44 = vld [vmem:[%s1221_s7 + $0x20] sm:$0xff]   ;;  %v934_v45 = vld [vmem:[%s1221_s7 + $0x28] sm:$0xff]   ;;  %v935_v46 = vld [vmem:[%s1221_s7 + $0x30] sm:$0xff]  }
 0x1c7   :  { %v230_v49 = vmul.f32 0.125, %v228_v47  ;;  %v231_v50 = vmul.f32 %v229_v48, %v229_v48  ;;  %v233_v53 = vsub.f32 %v211_v31, %v229_v48  ;;  %v936_v47 = vld [vmem:[%s1221_s7 + $0x38] sm:$0xff]   ;;  %v751_v48 = vld [vmem:[%s1218_s4 + $0x2] ss:$0 sm:$0xff] }
 0x1c9   :  { %v232_v51 = vsub.f32 %v230_v49, %v231_v50 }
 0x1cb   :  { %v234_v52 = vadd.f32 1e-05, %v232_v51 }
 0x1cd   :  { %937 = vrsqrt.f32 %v234_v52 }
 0x1d7   :  { %v938_v54 = vpop.eup %937 }
 0x1d8   :  { %v236_v56 = vmul.f32 %v938_v54, %v233_v53 }
 0x1da   :  { %v244_v58 = vmul.f32 %v702_v55, %v236_v56 }
 0x1dc   :  { %v252_v59 = vadd.f32 %v703_v57, %v244_v58 }
 0x1de   :  { %v253_v60 = vmax.f32 %v252_v59, 0.0 }
 0x1e0   :  { %v254_v61 = vpack.c.bf16 %v253_v60, %v253_v60 }
 0x1e2   :  { %857 = vmatmul.mubr.bf16.vlgmr.msra.gmra.mrb[4].mxu0 %v254_v61 }
 0x1e3   :  { %896 = vmatprep.mubr.msk.bf16.mxu0 %vm968_vm0, %v967_v1  ;;  %881 = vmatpush3.bf16.msra.mxu0 %v929_v40 }
 0x1e4   :  { %882 = vmatprep.subr.bf16.mxu0 %v967_v1 }
 0x1e7   :  { %883 = vmatpush3.bf16.msra.mxu0 %v930_v41 }
 0x1e8   :  { %884 = vmatprep.subr.bf16.mxu0 %v967_v1 }
 0x1eb   :  { %885 = vmatpush3.bf16.msra.mxu0 %v931_v42 }
 0x1ec   :  { %886 = vmatprep.subr.bf16.mxu0 %v967_v1 }
 0x1ef   :  { %887 = vmatpush3.bf16.msra.mxu0 %v932_v43 }
 0x1f0   :  { %888 = vmatprep.subr.bf16.mxu0 %v967_v1 }
 0x1f3   :  { %889 = vmatpush3.bf16.msra.mxu0 %v933_v44 }
 0x1f4   :  { %890 = vmatprep.subr.bf16.mxu0 %v967_v1 }
 0x1f7   :  { %891 = vmatpush3.bf16.msra.mxu0 %v934_v45 }
 0x1f8   :  { %892 = vmatprep.subr.bf16.mxu0 %v967_v1 }
 0x1fb   :  { %893 = vmatpush3.bf16.msra.mxu0 %v935_v46 }
 0x1fc   :  { %894 = vmatprep.subr.bf16.mxu0 %v967_v1 }
 0x1ff   :  { %895 = vmatpush3.bf16.msra.mxu0 %v936_v47 }
 0x2b5   :  { %v362_v8 = vpop.f32.mrb[4].mxu0 }
 0x2b6   :  { %v363_v9 = vadd.f32 %v721_v7, %v362_v8  ;;  %v858_v10 = vpop.f32.mrb[5].mxu0 }
 0x2b7   :  { %v365_v11 = vpop.f32.mrb[6].mxu0  ;;  %v761_v10 = vld [vmem:[%s1219_s5 + $0x2] ss:$0 sm:$0xff]  ;;  %s943_s5 = scalar_lea.vmem %s682_s24, 128 }
 0x2b8   :  { %v368_v12 = vmul.f32 %v363_v9, %v363_v9  ;;  %v369_v13 = vrot.slane %v363_v9, 4  ;;  %v859_v14 = vpop.f32.mrb[7].mxu0  ;;  %p944_p0 = scmp.ne.s32.totalorder %s682_s24, %s943_s5  ;;  %p949_p2 = scmp.lt.s32.totalorder %s943_s5, %s943_s5 }
 0x2ba   :  { %v370_v15 = vadd.f32 %v369_v13, %v363_v9  ;;  %v375_v16 = vrot.slane %v368_v12, 4  ;;  %p950_p3 = por %p949_p2, %p948_p1 }
 0x2bc   :  { %v371_v17 = vrot.slane %v370_v15, 2  ;;  %v376_v18 = vadd.f32 %v375_v16, %v368_v12  ;;  %v763_v12 = vld [vmem:[%s1220_s6 + $0x2] ss:$0 sm:$0xff]  ;;  %p951_p4 = pnand %p950_p3, %p944_p0 }
 0x2be   :  { %v372_v19 = vadd.f32 %v371_v17, %v370_v15  ;;  %v377_v20 = vrot.slane %v376_v18, 2  ;;  %v764_v17 = vld [vmem:[%s1222_s8] ss:$0 sm:$0xff] }
 0x2c0   :  { %v373_v21 = vrot.slane %v372_v19, 1  ;;  %v378_v22 = vadd.f32 %v377_v20, %v376_v18 }
 0x2c2   :  { %v374_v23 = vadd.f32 %v373_v21, %v372_v19  ;;  %v379_v24 = vrot.slane %v378_v22, 1 }
 0x2c4   :  { %v380_v25 = vadd.f32 %v379_v24, %v378_v22  ;;  %v381_v26 = vmul.f32 0.125, %v374_v23 }
 0x2c6   :  { %v382_v27 = vmul.f32 0.125, %v380_v25  ;;  %v383_v28 = vmul.f32 %v381_v26, %v381_v26  ;;  %v385_v31 = vsub.f32 %v363_v9, %v381_v26 }
 0x2c8   :  { %v384_v29 = vsub.f32 %v382_v27, %v383_v28 }
 0x2ca   :  { %v386_v30 = vadd.f32 1e-05, %v384_v29 }
 0x2cc   :  { %939 = vrsqrt.f32 %v386_v30 }
 0x2d6   :  { %v940_v32 = vpop.eup %939 }
 0x2d7   :  { %v388_v34 = vmul.f32 %v940_v32, %v385_v31 }
 0x2d9   :  { %v397_v36 = vmul.f32 %v731_v33, %v388_v34 }
 0x2db   :  { %v406_v37 = vadd.f32 %v733_v35, %v397_v36 }
 0x2dd   :  { %v407_v38 = vmax.f32 %v406_v37, 0.0 }
 0x2df   :  { %v408_v39 = vpack.c.bf16 %v407_v38, %v407_v38 }
 0x2e1   :  { %877 = vmatmul.mubr.bf16.vlgmr.msra.gmra.mrb[4].mxu1 %v408_v39 }
 0x3b4   :  { %v516_v49 = vpop.f32.mrb[4].mxu1 }
 0x3b5   :  { %v517_v50 = vadd.f32 %v751_v48, %v516_v49  ;;  %v878_v51 = vpop.f32.mrb[5].mxu1 }
 0x3b6   :  { %v519_v52 = vpop.f32.mrb[6].mxu1 }
 0x3b7   :  { %v522_v53 = vmul.f32 %v517_v50, %v517_v50  ;;  %v523_v54 = vrot.slane %v517_v50, 4  ;;  %v879_v55 = vpop.f32.mrb[7].mxu1 }
 0x3b9   :  { %v524_v56 = vadd.f32 %v523_v54, %v517_v50  ;;  %v529_v57 = vrot.slane %v522_v53, 4 }
 0x3bb   :  { %v525_v58 = vrot.slane %v524_v56, 2  ;;  %v530_v59 = vadd.f32 %v529_v57, %v522_v53 }
 0x3bd   :  { %v526_v60 = vadd.f32 %v525_v58, %v524_v56  ;;  %v531_v61 = vrot.slane %v530_v59, 2 }
 0x3bf   :  { %v527_v62 = vrot.slane %v526_v60, 1  ;;  %v532_v1 = vadd.f32 %v531_v61, %v530_v59 }
 0x3c1   :  { %v528_v63 = vadd.f32 %v527_v62, %v526_v60  ;;  %v533_v0 = vrot.slane %v532_v1, 1 }
 0x3c3   :  { %v534_v2 = vadd.f32 %v533_v0, %v532_v1  ;;  %v535_v3 = vmul.f32 0.125, %v528_v63 }
 0x3c5   :  { %v536_v4 = vmul.f32 0.125, %v534_v2  ;;  %v537_v5 = vmul.f32 %v535_v3, %v535_v3  ;;  %v539_v8 = vsub.f32 %v517_v50, %v535_v3 }
 0x3c7   :  { %v538_v6 = vsub.f32 %v536_v4, %v537_v5 }
 0x3c9   :  { %v540_v7 = vadd.f32 1e-05, %v538_v6 }
 0x3cb   :  { %941 = vrsqrt.f32 %v540_v7 }
 0x3d5   :  { %v942_v9 = vpop.eup %941 }
 0x3d6   :  { %v542_v11 = vmul.f32 %v942_v9, %v539_v8 }
 0x3d8   :  { %v551_v13 = vmul.f32 %v761_v10, %v542_v11 }
 0x3da   :  { %v560_v14 = vadd.f32 %v763_v12, %v551_v13 }
 0x3dc   :  { %v561_v15 = vmax.f32 %v560_v14, 0.0 }
 0x3de   :  { %v562_v16 = vpack.c.bf16 %v561_v15, %v561_v15 }
 0x3e0   :  { %897 = vmatmul.mubr.bf16.vlgmr.msra.gmra.mrb[8].mxu0 %v562_v16 }
 0x4b3   :  { %v668_v18 = vpop.f32.mrb[8].mxu0 }
 0x4b4   :  { %v669_v19 = vadd.f32 %v764_v17, %v668_v18  ;;  %v898_v20 = vpop.f32.mrb[9].mxu0 }
 0x4b5   :  { %v671_v21 = vpop.f32.mrb[10].mxu0 }
 0x4b6   :  { %674 = vst [vmem:[#allocation2] sm:$0xff] %v669_v19  ;;  %v899_v22 = vpop.f32.mrb[11].mxu0 }
 0x4b7   :  { %954 = shalt.err (!%p951_p4)
}
 0x4b8   :  { %s955_s8 = scalar_lea.hbm %s1223_s9, 128 }
 0x4b9   :  { %p956_p5 = scmp.ne.s32.totalorder %s1223_s9, %s955_s8  ;;  %p959_p6 = scmp.lt.u32.totalorder %s955_s8, %s1223_s9 }
 0x4bb   :  { %p961_p7 = pnand %p959_p6, %p956_p5 }
 0x4bd   :  { %964 = shalt.err (!%p961_p7)
}
 0x4be   :  { %684 = dma.vmem_to_hbm [thread:$0]  %s682_s24, 128, %s1223_s9, [#allocation3]  }
 0x4bf   :  { %965 = dma.done.wait [#allocation3], 128  }
 0x4c0   :  { %966 = vsyncadd [#allocation3], 4294967168 }
 0x4c1   :  { %688 = vsyncpa [#allocation3], 1 }

</bundles_post_ra>
